<compile_context>
chip_gen: v7x
topology: tpu7x:2x2x1
jax: 0.10.0
libtpu: 0.0.40
codegen_flags: <defaults>
</compile_context>

<pallas_src>
import math
from functools import partial

import jax
import jax.numpy as jnp
from jax import lax
from jax.experimental import pallas as pl
from jax.experimental.pallas import tpu as pltpu


# --------------------------------------------------------------------------- #
# Kernel
# --------------------------------------------------------------------------- #
def _ffn_kernel(x_ref, w1_ref, b1_ref, w2_ref, b2_ref, o_ref, acc_ref, *, precision):
    # x_ref : (tile_m, d_in)          w1_ref: (d_in, tile_h)   b1_ref: (1, tile_h)
    # w2_ref: (tile_h, O)             b2_ref: (1, O)
    # o_ref : (tile_m, O)             acc_ref: (tile_m, O) f32 scratch
    h_idx = pl.program_id(1)

    @pl.when(h_idx == 0)
    def _init():
        acc_ref[...] = jnp.zeros_like(acc_ref)

    # dense1 (+bias) + ReLU on this hidden chunk (exact: bias/ReLU are elementwise in H).
    h = jnp.dot(x_ref[...], w1_ref[...],
                preferred_element_type=jnp.float32, precision=precision)
    h = jnp.maximum(h + b1_ref[...].astype(jnp.float32), 0.0)

    # dense2 partial product, accumulated in f32 across hidden chunks.
    acc_ref[...] += jnp.dot(h.astype(w2_ref.dtype), w2_ref[...],
                            preferred_element_type=jnp.float32, precision=precision)

    @pl.when(h_idx == pl.num_programs(1) - 1)
    def _finalize():
        o_ref[...] = (acc_ref[...] + b2_ref[...].astype(jnp.float32)).astype(o_ref.dtype)


# --------------------------------------------------------------------------- #
# Tiling heuristics
# --------------------------------------------------------------------------- #
def _vmem_capacity_bytes() -> int:
    """Per-core VMEM capacity (generation-aware); conservative 64 MiB fallback."""
    try:
        cap = int(pltpu.get_tpu_info().vmem_capacity_bytes)
        if cap > 0:
            return cap
    except Exception:
        pass
    return 64 * 1024 * 1024  # v7x per-TC size: safe lower bound for all generations


def _pick_tile_h(H: int, cap_h: int):
    """Hidden-axis chunk: prefer a 128-multiple divisor of H; else pad H."""
    cap_h = max(128, cap_h)
    if H <= cap_h:
        return H, H
    start = cap_h - cap_h % 128
    for th in range(start, 127, -128):
        if H % th == 0:
            return th, H
    th = max(128, start)
    return th, -(-H // th) * th  # zero-padding H is exact (relu(0)=0, zero W2 rows)


def _choose_tile_m(m: int, per_row_bytes: int, budget_bytes: int) -> int:
    """Token-tile size: MXU-aligned, VMEM-budgeted, >=2 tiles for megacore when possible."""
    tile = max(8, budget_bytes // max(per_row_bytes, 1))
    if tile >= 256:
        tile = min(tile - tile % 256, 2048)   # full 256-wide MXU tiles (v6e/v7x)
    elif tile >= 128:
        tile = 128                            # v5e MXU tile
    else:
        tile = max(8, tile - tile % 8)
    if tile >= m:
        if m >= 256:
            # Split into two ~equal 128-aligned tiles so "parallel" can use both
            # TensorCores on v7x instead of leaving one idle.
            half = -(-m // 2)
            tile = -(-half // 128) * 128
        else:
            tile = m                          # single full-extent block (any size is legal)
    return tile


# --------------------------------------------------------------------------- #
# Wrapper
# --------------------------------------------------------------------------- #
def position_wise_ffn_forward(x: jnp.ndarray,
                              w1: jnp.ndarray, b1: jnp.ndarray,
                              w2: jnp.ndarray, b2: jnp.ndarray,
                              *, precision=None) -> jnp.ndarray:
    """x: (..., d_in) -> (..., num_outputs).  `precision` feeds both MXU matmuls."""
    *lead, d_in = x.shape
    H = w1.shape[1]
    O = w2.shape[1]
    assert w1.shape[0] == d_in and w2.shape[0] == H
    assert b1.shape == (H,) and b2.shape == (O,)

    m = int(math.prod(lead)) if lead else 1
    x2 = x.reshape(m, d_in)                      # collapse leading dims (no copy)

    x_isz = jnp.dtype(x.dtype).itemsize
    w_isz = jnp.dtype(w1.dtype).itemsize

    cap = _vmem_capacity_bytes()
    budget = int(cap * 0.8)                      # target ~80% of physical VMEM
    weight_budget = budget // 2

    # ---- hidden-axis chunking (weights resident if they comfortably fit) ----
    resident_w = (d_in * H + H * O + H + O) * w_isz
    if 2 * resident_w <= weight_budget:          # conservatively count double buffers
        tile_h, h_pad = H, H
    else:
        bytes_per_h = 2 * (d_in + O + 1) * w_isz  # dbl-buffered W1 col + W2 row + b1
        tile_h, h_pad = _pick_tile_h(H, weight_budget // max(bytes_per_h, 1))
    n_h = h_pad // tile_h

    if h_pad != H:
        w1 = jnp.pad(w1, ((0, 0), (0, h_pad - H)))
        b1 = jnp.pad(b1, ((0, h_pad - H),))
        w2 = jnp.pad(w2, ((0, h_pad - H), (0, 0)))

    weight_vmem = 2 * (d_in * tile_h + tile_h * O + tile_h + O) * w_isz

    # ---- token-axis tile: everything that scales with tile_m ----
    per_row = (2 * d_in * x_isz        # double-buffered x tile
               + 2 * O * x_isz         # double-buffered out tile
               + 4 * O                 # f32 accumulator scratch
               + (4 + w_isz) * tile_h)  # f32 intermediate + its cast for the 2nd matmul
    tile_m = _choose_tile_m(m, per_row, max(budget - weight_vmem, 8 * per_row))
    n_m = -(-m // tile_m)               # grid over-covers ragged tail; Pallas masks it

    est = weight_vmem + tile_m * per_row + (2 << 20)
    vmem_limit = int(min(max(est, 16 * 1024 * 1024), int(0.9 * cap)))

    b1_2d = b1.reshape(1, h_pad)
    b2_2d = b2.reshape(1, O)
    weights_resident = (n_h == 1)

    def build(single_buffer_const: bool):
        def spec(shape, imap, constant):
            # Constant block index -> no point double-buffering: halve its VMEM.
            if constant and single_buffer_const:
                return pl.BlockSpec(shape, imap, pipeline_mode=pl.Buffered(1))
            return pl.BlockSpec(shape, imap)

        return pl.pallas_call(
            partial(_ffn_kernel, precision=precision),
            out_shape=jax.ShapeDtypeStruct((m, O), x.dtype),
            grid_spec=pltpu.PrefetchScalarGridSpec(
                num_scalar_prefetch=0,
                grid=(n_m, n_h),  # reduction (hidden) axis last
                in_specs=[
                    pl.BlockSpec((tile_m, d_in), lambda i, h: (i, 0)),
                    spec((d_in, tile_h), lambda i, h: (0, h), weights_resident),
                    spec((1, tile_h),    lambda i, h: (0, h), weights_resident),
                    spec((tile_h, O),    lambda i, h: (h, 0), weights_resident),
                    spec((1, O),         lambda i, h: (0, 0), True),
                ],
                out_specs=pl.BlockSpec((tile_m, O), lambda i, h: (i, 0)),
                scratch_shapes=[pltpu.VMEM((tile_m, O), jnp.float32)],
            ),
            compiler_params=pltpu.CompilerParams(
                dimension_semantics=("parallel", "arbitrary"),
                vmem_limit_bytes=vmem_limit,
            ),
        )

    try:
        out = build(True)(x2, w1, b1_2d, w2, b2_2d)
    except Exception:
        # pipeline_mode=Buffered(1) unsupported on this build -> default buffering.
        out = build(False)(x2, w1, b1_2d, w2, b2_2d)

    return out.reshape(*lead, O)


class PositionWiseFFNPallas:
    """Mirror of the PyTorch PositionWiseFFN (dense1 -> ReLU -> dense2)."""

    def __init__(self, num_inputs: int, num_hiddens: int, num_outputs: int,
                 *, key, dtype=jnp.float32) -> None:
        k1, k2, k3, k4 = jax.random.split(key, 4)
        # nn.Linear default init: U(-1/sqrt(fan_in), 1/sqrt(fan_in)).
        bound1 = 1.0 / math.sqrt(num_inputs)
        bound2 = 1.0 / math.sqrt(num_hiddens)
        self.w1 = jax.random.uniform(k1, (num_inputs, num_hiddens), dtype, -bound1, bound1)
        self.b1 = jax.random.uniform(k2, (num_hiddens,), dtype, -bound1, bound1)
        self.w2 = jax.random.uniform(k3, (num_hiddens, num_outputs), dtype, -bound2, bound2)
        self.b2 = jax.random.uniform(k4, (num_outputs,), dtype, -bound2, bound2)

    def __call__(self, x: jnp.ndarray, *, precision=None) -> jnp.ndarray:
        return position_wise_ffn_forward(x, self.w1, self.b1, self.w2, self.b2,
                                         precision=precision)


if __name__ == "__main__":
    # Small shapes consistent with the module: (batch=2, seq=8, hidden=32).
    B, S, D_IN = 2, 8, 32
    NUM_HIDDENS, NUM_OUTPUTS = 32, 32

    key = jax.random.PRNGKey(0)
    kx, kp = jax.random.split(key)
    x = jax.random.normal(kx, (B, S, D_IN), dtype=jnp.float32)

    ffn = PositionWiseFFNPallas(D_IN, NUM_HIDDENS, NUM_OUTPUTS, key=kp)

    # Default path (single bf16 MXU pass, f32 accumulation) — the fast production config.
    out_fast = jax.block_until_ready(ffn(x))
    # Full-precision path for the tight numerical check.
    out_hi = jax.block_until_ready(ffn(x, precision=lax.Precision.HIGHEST))

    # Pure-JAX reference in full f32 precision.
    h_ref = jnp.maximum(
        jnp.dot(x, ffn.w1, precision=lax.Precision.HIGHEST) + ffn.b1, 0.0)
    ref = jnp.dot(h_ref, ffn.w2, precision=lax.Precision.HIGHEST) + ffn.b2

    assert out_hi.shape == (B, S, NUM_OUTPUTS), out_hi.shape
    assert out_fast.shape == (B, S, NUM_OUTPUTS), out_fast.shape
    err_hi = float(jnp.max(jnp.abs(out_hi - ref)))
    err_fast = float(jnp.max(jnp.abs(out_fast - ref)))
    assert jnp.allclose(out_hi, ref, atol=1e-5, rtol=1e-5), f"HIGHEST-path mismatch {err_hi}"
    assert jnp.allclose(out_fast, ref, atol=5e-2, rtol=5e-2), f"default-path mismatch {err_fast}"

    print("KERNEL_OK")
</pallas_src>

<mosaic_0001>
module attributes {stable_mosaic.version = 11 : i64} {
  func.func @_ffn_kernel(%arg0: i32, %arg1: i32, %arg2: memref<16x32xf32, #tpu.memory_space<vmem>>, %arg3: memref<32x32xf32, #tpu.memory_space<vmem>>, %arg4: memref<1x32xf32, #tpu.memory_space<vmem>>, %arg5: memref<32x32xf32, #tpu.memory_space<vmem>>, %arg6: memref<1x32xf32, #tpu.memory_space<vmem>>, %arg7: memref<16x32xf32, #tpu.memory_space<vmem>>, %arg8: memref<16x32xf32, #tpu.memory_space<vmem>>) attributes {dimension_semantics = [#tpu.dimension_semantics<parallel>, #tpu.dimension_semantics<arbitrary>], iteration_bounds = array<i64: 1, 1>, scalar_prefetch = 0 : i64, scratch_operands = 1 : i64, tpu.core_type = #tpu.core_type<tc>, window_params = [{transform_indices = @transform_0, window_bounds = array<i64: 16, 32>}, {pipeline_mode = #tpu.pipeline_mode<synchronous>, transform_indices = @transform_1, window_bounds = array<i64: 32, 32>}, {pipeline_mode = #tpu.pipeline_mode<synchronous>, transform_indices = @transform_2, window_bounds = array<i64: 1, 32>}, {pipeline_mode = #tpu.pipeline_mode<synchronous>, transform_indices = @transform_3, window_bounds = array<i64: 32, 32>}, {pipeline_mode = #tpu.pipeline_mode<synchronous>, transform_indices = @transform_4, window_bounds = array<i64: 1, 32>}, {transform_indices = @transform_5, window_bounds = array<i64: 16, 32>}]} {
    %c0_i32 = arith.constant 0 : i32
    %0 = arith.cmpi eq, %arg1, %c0_i32 : i32
    %1 = arith.extui %0 : i1 to i32
    %c0_i32_0 = arith.constant 0 : i32
    %2 = arith.cmpi ne, %1, %c0_i32_0 : i32
    scf.if %2 {
      %cst_16 = arith.constant 0.000000e+00 : f32
      %19 = vector.broadcast %cst_16 : f32 to vector<16x32xf32>
      %c0_17 = arith.constant 0 : index
      %c0_18 = arith.constant 0 : index
      %20 = vector.load %arg8[%c0_17, %c0_18] : memref<16x32xf32, #tpu.memory_space<vmem>>, vector<16x32xf32>
      tpu.vector_store %arg8[%c0_17, %c0_18], %19 {strides = array<i32>} : memref<16x32xf32, #tpu.memory_space<vmem>>, vector<16x32xf32>,
    } else {
    }
    %c0 = arith.constant 0 : index
    %c0_1 = arith.constant 0 : index
    %3 = vector.load %arg2[%c0, %c0_1] : memref<16x32xf32, #tpu.memory_space<vmem>>, vector<16x32xf32>
    %c0_2 = arith.constant 0 : index
    %c0_3 = arith.constant 0 : index
    %4 = vector.load %arg3[%c0_2, %c0_3] : memref<32x32xf32, #tpu.memory_space<vmem>>, vector<32x32xf32>
    %cst = arith.constant dense<0.000000e+00> : vector<16x32xf32>
    %5 = tpu.matmul %3, %4, %cst {dimension_numbers = #tpu.dot_dimension_numbers<[1], [0], [0], [1], [0, 0, 1, 1], [], []>} : vector<16x32xf32>, vector<32x32xf32>, vector<16x32xf32> -> vector<16x32xf32>
    %c0_4 = arith.constant 0 : index
    %c0_5 = arith.constant 0 : index
    %6 = vector.load %arg4[%c0_4, %c0_5] : memref<1x32xf32, #tpu.memory_space<vmem>>, vector<1x32xf32>
    %7 = vector.broadcast %6 : vector<1x32xf32> to vector<16x32xf32>
    %8 = arith.addf %5, %7 : vector<16x32xf32>
    %cst_6 = arith.constant 0.000000e+00 : f32
    %9 = vector.broadcast %cst_6 : f32 to vector<16x32xf32>
    %10 = arith.maximumf %8, %9 : vector<16x32xf32>
    %c0_7 = arith.constant 0 : index
    %c0_8 = arith.constant 0 : index
    %11 = vector.load %arg8[%c0_7, %c0_8] : memref<16x32xf32, #tpu.memory_space<vmem>>, vector<16x32xf32>
    %c0_9 = arith.constant 0 : index
    %c0_10 = arith.constant 0 : index
    %12 = vector.load %arg5[%c0_9, %c0_10] : memref<32x32xf32, #tpu.memory_space<vmem>>, vector<32x32xf32>
    %cst_11 = arith.constant dense<0.000000e+00> : vector<16x32xf32>
    %13 = tpu.matmul %10, %12, %cst_11 {dimension_numbers = #tpu.dot_dimension_numbers<[1], [0], [0], [1], [0, 0, 1, 1], [], []>} : vector<16x32xf32>, vector<32x32xf32>, vector<16x32xf32> -> vector<16x32xf32>
    %14 = arith.addf %11, %13 : vector<16x32xf32>
    %c0_12 = arith.constant 0 : index
    %c0_13 = arith.constant 0 : index
    %15 = vector.load %arg8[%c0_12, %c0_13] : memref<16x32xf32, #tpu.memory_space<vmem>>, vector<16x32xf32>
    tpu.vector_store %arg8[%c0_12, %c0_13], %14 {strides = array<i32>} : memref<16x32xf32, #tpu.memory_space<vmem>>, vector<16x32xf32>,
    %c0_i32_14 = arith.constant 0 : i32
    %16 = arith.cmpi eq, %arg1, %c0_i32_14 : i32
    %17 = arith.extui %16 : i1 to i32
    %c0_i32_15 = arith.constant 0 : i32
    %18 = arith.cmpi ne, %17, %c0_i32_15 : i32
    scf.if %18 {
      %c0_16 = arith.constant 0 : index
      %c0_17 = arith.constant 0 : index
      %19 = vector.load %arg8[%c0_16, %c0_17] : memref<16x32xf32, #tpu.memory_space<vmem>>, vector<16x32xf32>
      %c0_18 = arith.constant 0 : index
      %c0_19 = arith.constant 0 : index
      %20 = vector.load %arg6[%c0_18, %c0_19] : memref<1x32xf32, #tpu.memory_space<vmem>>, vector<1x32xf32>
      %21 = vector.broadcast %20 : vector<1x32xf32> to vector<16x32xf32>
      %22 = arith.addf %19, %21 : vector<16x32xf32>
      %c0_20 = arith.constant 0 : index
      %c0_21 = arith.constant 0 : index
      %23 = vector.load %arg7[%c0_20, %c0_21] : memref<16x32xf32, #tpu.memory_space<vmem>>, vector<16x32xf32>
      tpu.vector_store %arg7[%c0_20, %c0_21], %22 {strides = array<i32>} : memref<16x32xf32, #tpu.memory_space<vmem>>, vector<16x32xf32>,
    } else {
    }
    return
  }
  func.func @transform_0(%arg0: i32, %arg1: i32) -> (i32, i32) {
    %c0_i32 = arith.constant 0 : i32
    %c0_i32_0 = arith.constant 0 : i32
    return %arg0, %c0_i32 : i32, i32
  }
  func.func @transform_1(%arg0: i32, %arg1: i32) -> (i32, i32) {
    %c0_i32 = arith.constant 0 : i32
    %c0_i32_0 = arith.constant 0 : i32
    return %c0_i32, %arg1 : i32, i32
  }
  func.func @transform_2(%arg0: i32, %arg1: i32) -> (i32, i32) {
    %c0_i32 = arith.constant 0 : i32
    %c0_i32_0 = arith.constant 0 : i32
    return %c0_i32, %arg1 : i32, i32
  }
  func.func @transform_3(%arg0: i32, %arg1: i32) -> (i32, i32) {
    %c0_i32 = arith.constant 0 : i32
    %c0_i32_0 = arith.constant 0 : i32
    return %arg1, %c0_i32 : i32, i32
  }
  func.func @transform_4(%arg0: i32, %arg1: i32) -> (i32, i32) {
    %c0_i32 = arith.constant 0 : i32
    %c0_i32_0 = arith.constant 0 : i32
    %c0_i32_1 = arith.constant 0 : i32
    return %c0_i32, %c0_i32_0 : i32, i32
  }
  func.func @transform_5(%arg0: i32, %arg1: i32) -> (i32, i32) {
    %c0_i32 = arith.constant 0 : i32
    %c0_i32_0 = arith.constant 0 : i32
    return %arg0, %c0_i32 : i32, i32
  }
}

module attributes {stable_mosaic.version = 11 : i64} {
  func.func @_ffn_kernel(%arg0: i32, %arg1: i32, %arg2: memref<16x32xf32, #tpu.memory_space<vmem>>, %arg3: memref<32x32xf32, #tpu.memory_space<vmem>>, %arg4: memref<1x32xf32, #tpu.memory_space<vmem>>, %arg5: memref<32x32xf32, #tpu.memory_space<vmem>>, %arg6: memref<1x32xf32, #tpu.memory_space<vmem>>, %arg7: memref<16x32xf32, #tpu.memory_space<vmem>>, %arg8: memref<16x32xf32, #tpu.memory_space<vmem>>) attributes {dimension_semantics = [#tpu.dimension_semantics<parallel>, #tpu.dimension_semantics<arbitrary>], iteration_bounds = array<i64: 1, 1>, scalar_prefetch = 0 : i64, scratch_operands = 1 : i64, tpu.core_type = #tpu.core_type<tc>, window_params = [{transform_indices = @transform_0, window_bounds = array<i64: 16, 32>}, {transform_indices = @transform_1, window_bounds = array<i64: 32, 32>}, {transform_indices = @transform_2, window_bounds = array<i64: 1, 32>}, {transform_indices = @transform_3, window_bounds = array<i64: 32, 32>}, {pipeline_mode = #tpu.pipeline_mode<synchronous>, transform_indices = @transform_4, window_bounds = array<i64: 1, 32>}, {transform_indices = @transform_5, window_bounds = array<i64: 16, 32>}]} {
    %c0_i32 = arith.constant 0 : i32
    %0 = arith.cmpi eq, %arg1, %c0_i32 : i32
    %1 = arith.extui %0 : i1 to i32
    %c0_i32_0 = arith.constant 0 : i32
    %2 = arith.cmpi ne, %1, %c0_i32_0 : i32
    scf.if %2 {
      %cst_16 = arith.constant 0.000000e+00 : f32
      %19 = vector.broadcast %cst_16 : f32 to vector<16x32xf32>
      %c0_17 = arith.constant 0 : index
      %c0_18 = arith.constant 0 : index
      %20 = vector.load %arg8[%c0_17, %c0_18] : memref<16x32xf32, #tpu.memory_space<vmem>>, vector<16x32xf32>
      tpu.vector_store %arg8[%c0_17, %c0_18], %19 {strides = array<i32>} : memref<16x32xf32, #tpu.memory_space<vmem>>, vector<16x32xf32>,
    } else {
    }
    %c0 = arith.constant 0 : index
    %c0_1 = arith.constant 0 : index
    %3 = vector.load %arg2[%c0, %c0_1] : memref<16x32xf32, #tpu.memory_space<vmem>>, vector<16x32xf32>
    %c0_2 = arith.constant 0 : index
    %c0_3 = arith.constant 0 : index
    %4 = vector.load %arg3[%c0_2, %c0_3] : memref<32x32xf32, #tpu.memory_space<vmem>>, vector<32x32xf32>
    %cst = arith.constant dense<0.000000e+00> : vector<16x32xf32>
    %5 = tpu.matmul %3, %4, %cst {dimension_numbers = #tpu.dot_dimension_numbers<[1], [0], [0], [1], [0, 0, 1, 1], [], []>} : vector<16x32xf32>, vector<32x32xf32>, vector<16x32xf32> -> vector<16x32xf32>
    %c0_4 = arith.constant 0 : index
    %c0_5 = arith.constant 0 : index
    %6 = vector.load %arg4[%c0_4, %c0_5] : memref<1x32xf32, #tpu.memory_space<vmem>>, vector<1x32xf32>
    %7 = vector.broadcast %6 : vector<1x32xf32> to vector<16x32xf32>
    %8 = arith.addf %5, %7 : vector<16x32xf32>
    %cst_6 = arith.constant 0.000000e+00 : f32
    %9 = vector.broadcast %cst_6 : f32 to vector<16x32xf32>
    %10 = arith.maximumf %8, %9 : vector<16x32xf32>
    %c0_7 = arith.constant 0 : index
    %c0_8 = arith.constant 0 : index
    %11 = vector.load %arg8[%c0_7, %c0_8] : memref<16x32xf32, #tpu.memory_space<vmem>>, vector<16x32xf32>
    %c0_9 = arith.constant 0 : index
    %c0_10 = arith.constant 0 : index
    %12 = vector.load %arg5[%c0_9, %c0_10] : memref<32x32xf32, #tpu.memory_space<vmem>>, vector<32x32xf32>
    %cst_11 = arith.constant dense<0.000000e+00> : vector<16x32xf32>
    %13 = tpu.matmul %10, %12, %cst_11 {dimension_numbers = #tpu.dot_dimension_numbers<[1], [0], [0], [1], [0, 0, 1, 1], [], []>} : vector<16x32xf32>, vector<32x32xf32>, vector<16x32xf32> -> vector<16x32xf32>
    %14 = arith.addf %11, %13 : vector<16x32xf32>
    %c0_12 = arith.constant 0 : index
    %c0_13 = arith.constant 0 : index
    %15 = vector.load %arg8[%c0_12, %c0_13] : memref<16x32xf32, #tpu.memory_space<vmem>>, vector<16x32xf32>
    tpu.vector_store %arg8[%c0_12, %c0_13], %14 {strides = array<i32>} : memref<16x32xf32, #tpu.memory_space<vmem>>, vector<16x32xf32>,
    %c0_i32_14 = arith.constant 0 : i32
    %16 = arith.cmpi eq, %arg1, %c0_i32_14 : i32
    %17 = arith.extui %16 : i1 to i32
    %c0_i32_15 = arith.constant 0 : i32
    %18 = arith.cmpi ne, %17, %c0_i32_15 : i32
    scf.if %18 {
      %c0_16 = arith.constant 0 : index
      %c0_17 = arith.constant 0 : index
      %19 = vector.load %arg8[%c0_16, %c0_17] : memref<16x32xf32, #tpu.memory_space<vmem>>, vector<16x32xf32>
      %c0_18 = arith.constant 0 : index
      %c0_19 = arith.constant 0 : index
      %20 = vector.load %arg6[%c0_18, %c0_19] : memref<1x32xf32, #tpu.memory_space<vmem>>, vector<1x32xf32>
      %21 = vector.broadcast %20 : vector<1x32xf32> to vector<16x32xf32>
      %22 = arith.addf %19, %21 : vector<16x32xf32>
      %c0_20 = arith.constant 0 : index
      %c0_21 = arith.constant 0 : index
      %23 = vector.load %arg7[%c0_20, %c0_21] : memref<16x32xf32, #tpu.memory_space<vmem>>, vector<16x32xf32>
      tpu.vector_store %arg7[%c0_20, %c0_21], %22 {strides = array<i32>} : memref<16x32xf32, #tpu.memory_space<vmem>>, vector<16x32xf32>,
    } else {
    }
    return
  }
  func.func @transform_0(%arg0: i32, %arg1: i32) -> (i32, i32) {
    %c0_i32 = arith.constant 0 : i32
    %c0_i32_0 = arith.constant 0 : i32
    return %arg0, %c0_i32 : i32, i32
  }
  func.func @transform_1(%arg0: i32, %arg1: i32) -> (i32, i32) {
    %c0_i32 = arith.constant 0 : i32
    %c0_i32_0 = arith.constant 0 : i32
    return %c0_i32, %arg1 : i32, i32
  }
  func.func @transform_2(%arg0: i32, %arg1: i32) -> (i32, i32) {
    %c0_i32 = arith.constant 0 : i32
    %c0_i32_0 = arith.constant 0 : i32
    return %c0_i32, %arg1 : i32, i32
  }
  func.func @transform_3(%arg0: i32, %arg1: i32) -> (i32, i32) {
    %c0_i32 = arith.constant 0 : i32
    %c0_i32_0 = arith.constant 0 : i32
    return %arg1, %c0_i32 : i32, i32
  }
  func.func @transform_4(%arg0: i32, %arg1: i32) -> (i32, i32) {
    %c0_i32 = arith.constant 0 : i32
    %c0_i32_0 = arith.constant 0 : i32
    %c0_i32_1 = arith.constant 0 : i32
    return %c0_i32, %c0_i32_0 : i32, i32
  }
  func.func @transform_5(%arg0: i32, %arg1: i32) -> (i32, i32) {
    %c0_i32 = arith.constant 0 : i32
    %c0_i32_0 = arith.constant 0 : i32
    return %arg0, %c0_i32 : i32, i32
  }
}

</mosaic_0001>

<bundles_post_ra>
// kernel: tpu_custom_call.1
= control target key start
LH: loop header
LB: loop body
LE: loop exit
PB: predicated region body
PF: predicated region fallthrough
CT: control target
= control target key end

     0   :  { %10 = vsyncpa [#allocation4], 0  ;;  %s568_s0 = inlined_call_operand.hbm [shape: f32[16,32], index: 0, kind: input, shape index: {}]   ;;  %s569_s1 = inlined_call_operand.hbm [shape: f32[32,32], index: 1, kind: input, shape index: {}]   ;;  %s570_s2 = inlined_call_operand.vmem [shape: f32[1,32], index: 2, kind: input, shape index: {}]   ;;  %s571_s3 = inlined_call_operand.hbm [shape: f32[32,32], index: 3, kind: input, shape index: {}]   ;;  %s572_s4 = inlined_call_operand.vmem [shape: f32[1,32], index: 4, kind: input, shape index: {}]   ;;  %s573_s5 = inlined_call_operand.hbm [shape: f32[16,32], index: 5, kind: output, shape index: {}]  }
   0x1   :  { %11 = vsyncpa [#allocation7], 0 }
   0x2   :  { %12 = vsyncpa [#allocation5], 0  ;;  %s448_s18 = smov [#allocation6]   ;;  %s449_s20 = smov [#allocation3]  }
   0x3   :  { %s30_s19 = sshll.u32 %s448_s18, 4  ;;  %s18_s21 = sshll.u32 %s449_s20, 4  ;;  %s31_s19 = int_to_ptr.vmem [resolvable:$true] %s30_s19  ;;  %s485_s21 = int_to_ptr.vmem [resolvable:$true] %s18_s21 }
   0x4   :  { %s354_s24 = scalar_lea.hbm %s569_s1, 512 }
   0x5   :  { %p355_p0 = scmp.ne.s32.totalorder %s569_s1, %s354_s24  ;;  %p358_p1 = scmp.lt.u32.totalorder %s354_s24, %s569_s1 }
   0x7   :  { %p360_p2 = pnand %p358_p1, %p355_p0 }
   0x9   :  { %363 = shalt.err (!%p360_p2)
}
   0xa   :  { %s364_s29 = scalar_lea.vmem %s31_s19, 512  ;;  %p369_p4 = scmp.lt.s32.totalorder %s31_s19, %s31_s19 }
   0xb   :  { %p365_p3 = scmp.ne.s32.totalorder %s31_s19, %s364_s29  ;;  %p370_p5 = scmp.lt.s32.totalorder %s364_s29, %s364_s29 }
   0xd   :  { %p371_p6 = por %p370_p5, %p369_p4 }
   0xf   :  { %p372_p7 = pnand %p371_p6, %p365_p3 }
  0x11   :  { %375 = shalt.err (!%p372_p7)
}
  0x12   :  { %s450_s30 = smov 128   ;;  %s451_s6 = smov 8  }
  0x13   :  { %36 = dma.hbm_to_vmem [thread:$0]  %s569_s1, 512, %s31_s19, [#allocation7], %s450_s30, %s450_s30, %s451_s6  }
  0x14   :  { %s376_s11 = scalar_lea.hbm %s568_s0, 256 }
  0x15   :  { %p377_p8 = scmp.ne.s32.totalorder %s568_s0, %s376_s11  ;;  %p380_p9 = scmp.lt.u32.totalorder %s376_s11, %s568_s0 }
  0x17   :  { %p382_p10 = pnand %p380_p9, %p377_p8 }
  0x19   :  { %385 = shalt.err (!%p382_p10)
}
  0x1a   :  { %s386_s16 = scalar_lea.vmem %s485_s21, 256  ;;  %p391_p12 = scmp.lt.s32.totalorder %s485_s21, %s485_s21 }
  0x1b   :  { %p387_p11 = scmp.ne.s32.totalorder %s485_s21, %s386_s16  ;;  %p392_p13 = scmp.lt.s32.totalorder %s386_s16, %s386_s16 }
  0x1d   :  { %p393_p0 = por %p392_p13, %p391_p12 }
  0x1f   :  { %p394_p1 = pnand %p393_p0, %p387_p11 }
  0x21   :  { %397 = shalt.err (!%p394_p1)
}
  0x22   :  { %24 = dma.hbm_to_vmem [thread:$0]  %s568_s0, 256, %s485_s21, [#allocation4], %s450_s30, %s450_s30, %s451_s6  }
  0x23   :  { %s452_s18 = smov [#allocation8]   ;;  %s398_s23 = scalar_lea.hbm %s571_s3, 512 }
  0x24   :  { %s44_s19 = sshll.u32 %s452_s18, 4  ;;  %p399_p2 = scmp.ne.s32.totalorder %s571_s3, %s398_s23  ;;  %s45_s19 = int_to_ptr.vmem [resolvable:$true] %s44_s19 }
  0x25   :  { %p402_p3 = scmp.lt.u32.totalorder %s398_s23, %s571_s3 }
  0x27   :  { %p404_p4 = pnand %p402_p3, %p399_p2 }
  0x29   :  { %407 = shalt.err (!%p404_p4)
}
  0x2a   :  { %s408_s28 = scalar_lea.vmem %s45_s19, 512  ;;  %p413_p6 = scmp.lt.s32.totalorder %s45_s19, %s45_s19 }
  0x2b   :  { %p409_p5 = scmp.ne.s32.totalorder %s45_s19, %s408_s28  ;;  %p414_p7 = scmp.lt.s32.totalorder %s408_s28, %s408_s28 }
  0x2d   :  { %p415_p8 = por %p414_p7, %p413_p6 }
  0x2f   :  { %p416_p9 = pnand %p415_p8, %p409_p5 }
  0x31   :  { %419 = shalt.err (!%p416_p9)
}
  0x32   :  { %50 = dma.hbm_to_vmem [thread:$0]  %s571_s3, 512, %s45_s19, [#allocation7], %s450_s30, %s450_s30, %s451_s6  }
  0x33   :  { %442 = dma.done.wait [#allocation4], 256  }
  0x34   :  { %443 = vsyncadd [#allocation4], 4294967040 }
  0x35   :  { %444 = dma.done.wait [#allocation7], 1024  }
  0x36   :  { %445 = vsyncadd [#allocation7], 4294966272  ;;  %vm66_vm0 = vcmask 261120   ;;  %v71_v0 = vld [vmem:[#allocation6] sm:$0xff]  ;;  %v72_v1 = vld [vmem:[#allocation6 + $0x8] sm:$0xff]  ;;  %v453_v14 = vmov 0.0  }
  0x37   :  { %v73_v2 = vld [vmem:[#allocation6 + $0x10] sm:$0xff]  ;;  %v331_v3 = vpack.c.bf16 %v72_v1, %v71_v0  ;;  %v74_v4 = vld [vmem:[#allocation6 + $0x18] sm:$0xff]  ;;  %v168_v7 = vld [vmem:[#allocation8] sm:$0xff]  ;;  %68 = vst.msk [vmem:[#allocation2 + $0x8] sm:$0xff] %vm66_vm0, %v453_v14  ;;  %s454_s8 = smov [#allocation9]  }
  0x38   :  { %v69_v5 = vld [vmem:[#allocation3] sm:$0xff]  ;;  %v335_v6 = vpack.c.bf16 %v74_v4, %v73_v2  ;;  %v169_v8 = vld [vmem:[#allocation8 + $0x8] sm:$0xff]  ;;  %v70_v10 = vld [vmem:[#allocation3 + $0x8] sm:$0xff]  ;;  %67 = vst.msk [vmem:[#allocation2] sm:$0xff] %vm66_vm0, %v453_v14  ;;  %s278_s9 = sshll.u32 %s454_s8, 4  ;;  %s279_s9 = int_to_ptr.vmem [resolvable:$true] %s278_s9 }
  0x39   :  { %317 = vmatprep.mubr.msk.f32.mxu0 %vm66_vm0, %v69_v5  ;;  %332 = vmatprep.subr.bf16.mxu0 %v331_v3  ;;  %v339_v9 = vpack.c.bf16 %v169_v8, %v168_v7  ;;  %v170_v11 = vld [vmem:[#allocation8 + $0x10] sm:$0xff]  ;;  %v171_v12 = vld [vmem:[#allocation8 + $0x18] sm:$0xff]  ;;  %v291_v15 = vld [vmem:[%s570_s2] ss:$0 sm:$0xff]  ;;  %s420_s10 = scalar_lea.vmem %s279_s9, 256  ;;  %p425_p11 = scmp.lt.s32.totalorder %s279_s9, %s279_s9 }
  0x3a   :  { %334 = vmatpush3.bf16.msra.mxu0 %v331_v3  ;;  %v343_v13 = vpack.c.bf16 %v171_v12, %v170_v11  ;;  %v296_v28 = vld [vmem:[%s572_s4] ss:$0 sm:$0xff]  ;;  %p421_p10 = scmp.ne.s32.totalorder %s279_s9, %s420_s10  ;;  %p426_p12 = scmp.lt.s32.totalorder %s420_s10, %s420_s10 }
  0x3b   :  { %336 = vmatprep.subr.bf16.mxu0 %v335_v6  ;;  %340 = vmatprep.subr.bf16.mxu1 %v339_v9 }
  0x3c   :  { %342 = vmatpush3.bf16.msra.mxu1 %v339_v9  ;;  %p427_p13 = por %p426_p12, %p425_p11 }
  0x3d   :  { %344 = vmatprep.subr.bf16.mxu1 %v343_v13 }
  0x3e   :  { %338 = vmatpush3.bf16.msra.mxu0 %v335_v6  ;;  %v167_v22 = vld [vmem:[#allocation2 + $0x8] sm:$0xff]  ;;  %p428_p0 = pnand %p427_p13, %p421_p10 }
  0x3f   :  { %v166_v23 = vld [vmem:[#allocation2] sm:$0xff] }
  0x40   :  { %346 = vmatpush3.bf16.msra.mxu1 %v343_v13 }
  0x41   :  { %318 = vmatmul.mubr.msk.f32.vlgmr.msra.gmra.mrb[0].mxu0 %vm66_vm0, %v70_v10 }
 0x114   :  { %v319_v16 = vpop.f32.mrb[0].mxu0 }
 0x115   :  { %v161_v17 = vadd.f32 %v319_v16, %v291_v15  ;;  %v155_v18 = vpop.f32.mrb[1].mxu0 }
 0x116   :  { %v156_v19 = vadd.f32 %v291_v15, %v155_v18 }
 0x117   :  { %v165_v21 = vmax.f32 %v161_v17, 0.0 }
 0x118   :  { %v164_v20 = vmax.f32 %v156_v19, 0.0 }
 0x11a   :  { %328 = vmatprep.mubr.msk.f32.mxu1 %vm66_vm0, %v164_v20 }
 0x11b   :  { %329 = vmatmul.mubr.msk.f32.vlgmr.msra.gmra.mrb[0].mxu1 %vm66_vm0, %v165_v21 }
 0x1ee   :  { %v330_v24 = vpop.f32.mrb[0].mxu1 }
 0x1ef   :  { %v254_v25 = vadd.f32 %v330_v24, %v167_v22  ;;  %v244_v26 = vpop.f32.mrb[1].mxu1 }
 0x1f0   :  { %v253_v27 = vadd.f32 %v244_v26, %v166_v23 }
 0x1f1   :  { %256 = vst.msk [vmem:[#allocation2 + $0x8] sm:$0xff] %vm66_vm0, %v254_v25 }
 0x1f2   :  { %255 = vst.msk [vmem:[#allocation2] sm:$0xff] %vm66_vm0, %v253_v27 }
 0x1f8   :  { %v261_v29 = vld [vmem:[#allocation2 + $0x8] sm:$0xff] }
 0x1f9   :  { %v260_v30 = vld [vmem:[#allocation2] sm:$0xff]  ;;  %v270_v31 = vadd.f32 %v296_v28, %v261_v29 }
 0x1fa   :  { %v269_v32 = vadd.f32 %v296_v28, %v260_v30 }
 0x1fb   :  { %272 = vst.msk [vmem:[#allocation9 + $0x8] sm:$0xff] %vm66_vm0, %v270_v31 }
 0x1fc   :  { %271 = vst.msk [vmem:[#allocation9] sm:$0xff] %vm66_vm0, %v269_v32 }
 0x1fd   :  { %431 = shalt.err (!%p428_p0)
}
 0x1fe   :  { %s432_s12 = scalar_lea.hbm %s573_s5, 256 }
 0x1ff   :  { %p433_p1 = scmp.ne.s32.totalorder %s573_s5, %s432_s12  ;;  %p436_p2 = scmp.lt.u32.totalorder %s432_s12, %s573_s5 }
 0x201   :  { %p438_p3 = pnand %p436_p2, %p433_p1 }
 0x203   :  { %441 = shalt.err (!%p438_p3)
}
 0x204   :  { %284 = dma.vmem_to_hbm [thread:$0]  %s279_s9, 256, %s573_s5, [#allocation5], %s450_s30, %s450_s30, %s451_s6  }
 0x205   :  { %446 = dma.done.wait [#allocation5], 256  }
 0x206   :  { %447 = vsyncadd [#allocation5], 4294967040 }
 0x207   :  { %288 = vsyncpa [#allocation4], 1 }
 0x208   :  { %289 = vsyncpa [#allocation7], 1 }
 0x209   :  { %290 = vsyncpa [#allocation5], 1 }

// kernel: tpu_custom_call.1
= control target key start
LH: loop header
LB: loop body
LE: loop exit
PB: predicated region body
PF: predicated region fallthrough
CT: control target
= control target key end

     0   :  { %10 = vsyncpa [#allocation4], 0  ;;  %s568_s0 = inlined_call_operand.hbm [shape: f32[16,32], index: 0, kind: input, shape index: {}]   ;;  %s569_s1 = inlined_call_operand.hbm [shape: f32[32,32], index: 1, kind: input, shape index: {}]   ;;  %s570_s2 = inlined_call_operand.vmem [shape: f32[1,32], index: 2, kind: input, shape index: {}]   ;;  %s571_s3 = inlined_call_operand.hbm [shape: f32[32,32], index: 3, kind: input, shape index: {}]   ;;  %s572_s4 = inlined_call_operand.vmem [shape: f32[1,32], index: 4, kind: input, shape index: {}]   ;;  %s573_s5 = inlined_call_operand.hbm [shape: f32[16,32], index: 5, kind: output, shape index: {}]  }
   0x1   :  { %11 = vsyncpa [#allocation7], 0 }
   0x2   :  { %12 = vsyncpa [#allocation5], 0  ;;  %s448_s18 = smov [#allocation6]   ;;  %s449_s20 = smov [#allocation3]  }
   0x3   :  { %s30_s19 = sshll.u32 %s448_s18, 4  ;;  %s18_s21 = sshll.u32 %s449_s20, 4  ;;  %s31_s19 = int_to_ptr.vmem [resolvable:$true] %s30_s19  ;;  %s485_s21 = int_to_ptr.vmem [resolvable:$true] %s18_s21 }
   0x4   :  { %s354_s24 = scalar_lea.hbm %s569_s1, 512 }
   0x5   :  { %p355_p0 = scmp.ne.s32.totalorder %s569_s1, %s354_s24  ;;  %p358_p1 = scmp.lt.u32.totalorder %s354_s24, %s569_s1 }
   0x7   :  { %p360_p2 = pnand %p358_p1, %p355_p0 }
   0x9   :  { %363 = shalt.err (!%p360_p2)
}
   0xa   :  { %s364_s29 = scalar_lea.vmem %s31_s19, 512  ;;  %p369_p4 = scmp.lt.s32.totalorder %s31_s19, %s31_s19 }
   0xb   :  { %p365_p3 = scmp.ne.s32.totalorder %s31_s19, %s364_s29  ;;  %p370_p5 = scmp.lt.s32.totalorder %s364_s29, %s364_s29 }
   0xd   :  { %p371_p6 = por %p370_p5, %p369_p4 }
   0xf   :  { %p372_p7 = pnand %p371_p6, %p365_p3 }
  0x11   :  { %375 = shalt.err (!%p372_p7)
}
  0x12   :  { %s450_s30 = smov 128   ;;  %s451_s6 = smov 8  }
  0x13   :  { %36 = dma.hbm_to_vmem [thread:$0]  %s569_s1, 512, %s31_s19, [#allocation7], %s450_s30, %s450_s30, %s451_s6  }
  0x14   :  { %s376_s11 = scalar_lea.hbm %s568_s0, 256 }
  0x15   :  { %p377_p8 = scmp.ne.s32.totalorder %s568_s0, %s376_s11  ;;  %p380_p9 = scmp.lt.u32.totalorder %s376_s11, %s568_s0 }
  0x17   :  { %p382_p10 = pnand %p380_p9, %p377_p8 }
  0x19   :  { %385 = shalt.err (!%p382_p10)
}
  0x1a   :  { %s386_s16 = scalar_lea.vmem %s485_s21, 256  ;;  %p391_p12 = scmp.lt.s32.totalorder %s485_s21, %s485_s21 }
  0x1b   :  { %p387_p11 = scmp.ne.s32.totalorder %s485_s21, %s386_s16  ;;  %p392_p13 = scmp.lt.s32.totalorder %s386_s16, %s386_s16 }
  0x1d   :  { %p393_p0 = por %p392_p13, %p391_p12 }
  0x1f   :  { %p394_p1 = pnand %p393_p0, %p387_p11 }
  0x21   :  { %397 = shalt.err (!%p394_p1)
}
  0x22   :  { %24 = dma.hbm_to_vmem [thread:$0]  %s568_s0, 256, %s485_s21, [#allocation4], %s450_s30, %s450_s30, %s451_s6  }
  0x23   :  { %s452_s18 = smov [#allocation8]   ;;  %s398_s23 = scalar_lea.hbm %s571_s3, 512 }
  0x24   :  { %s44_s19 = sshll.u32 %s452_s18, 4  ;;  %p399_p2 = scmp.ne.s32.totalorder %s571_s3, %s398_s23  ;;  %s45_s19 = int_to_ptr.vmem [resolvable:$true] %s44_s19 }
  0x25   :  { %p402_p3 = scmp.lt.u32.totalorder %s398_s23, %s571_s3 }
  0x27   :  { %p404_p4 = pnand %p402_p3, %p399_p2 }
  0x29   :  { %407 = shalt.err (!%p404_p4)
}
  0x2a   :  { %s408_s28 = scalar_lea.vmem %s45_s19, 512  ;;  %p413_p6 = scmp.lt.s32.totalorder %s45_s19, %s45_s19 }
  0x2b   :  { %p409_p5 = scmp.ne.s32.totalorder %s45_s19, %s408_s28  ;;  %p414_p7 = scmp.lt.s32.totalorder %s408_s28, %s408_s28 }
  0x2d   :  { %p415_p8 = por %p414_p7, %p413_p6 }
  0x2f   :  { %p416_p9 = pnand %p415_p8, %p409_p5 }
  0x31   :  { %419 = shalt.err (!%p416_p9)
}
  0x32   :  { %50 = dma.hbm_to_vmem [thread:$0]  %s571_s3, 512, %s45_s19, [#allocation7], %s450_s30, %s450_s30, %s451_s6  }
  0x33   :  { %442 = dma.done.wait [#allocation4], 256  }
  0x34   :  { %443 = vsyncadd [#allocation4], 4294967040 }
  0x35   :  { %444 = dma.done.wait [#allocation7], 1024  }
  0x36   :  { %445 = vsyncadd [#allocation7], 4294966272  ;;  %vm66_vm0 = vcmask 261120   ;;  %v71_v0 = vld [vmem:[#allocation6] sm:$0xff]  ;;  %v72_v1 = vld [vmem:[#allocation6 + $0x8] sm:$0xff]  ;;  %v453_v14 = vmov 0.0  }
  0x37   :  { %v73_v2 = vld [vmem:[#allocation6 + $0x10] sm:$0xff]  ;;  %v331_v3 = vpack.c.bf16 %v72_v1, %v71_v0  ;;  %v74_v4 = vld [vmem:[#allocation6 + $0x18] sm:$0xff]  ;;  %v168_v7 = vld [vmem:[#allocation8] sm:$0xff]  ;;  %68 = vst.msk [vmem:[#allocation2 + $0x8] sm:$0xff] %vm66_vm0, %v453_v14  ;;  %s454_s8 = smov [#allocation9]  }
  0x38   :  { %v69_v5 = vld [vmem:[#allocation3] sm:$0xff]  ;;  %v335_v6 = vpack.c.bf16 %v74_v4, %v73_v2  ;;  %v169_v8 = vld [vmem:[#allocation8 + $0x8] sm:$0xff]  ;;  %v70_v10 = vld [vmem:[#allocation3 + $0x8] sm:$0xff]  ;;  %67 = vst.msk [vmem:[#allocation2] sm:$0xff] %vm66_vm0, %v453_v14  ;;  %s278_s9 = sshll.u32 %s454_s8, 4  ;;  %s279_s9 = int_to_ptr.vmem [resolvable:$true] %s278_s9 }
  0x39   :  { %317 = vmatprep.mubr.msk.f32.mxu0 %vm66_vm0, %v69_v5  ;;  %332 = vmatprep.subr.bf16.mxu0 %v331_v3  ;;  %v339_v9 = vpack.c.bf16 %v169_v8, %v168_v7  ;;  %v170_v11 = vld [vmem:[#allocation8 + $0x10] sm:$0xff]  ;;  %v171_v12 = vld [vmem:[#allocation8 + $0x18] sm:$0xff]  ;;  %v291_v15 = vld [vmem:[%s570_s2] ss:$0 sm:$0xff]  ;;  %s420_s10 = scalar_lea.vmem %s279_s9, 256  ;;  %p425_p11 = scmp.lt.s32.totalorder %s279_s9, %s279_s9 }
  0x3a   :  { %334 = vmatpush3.bf16.msra.mxu0 %v331_v3  ;;  %v343_v13 = vpack.c.bf16 %v171_v12, %v170_v11  ;;  %v296_v28 = vld [vmem:[%s572_s4] ss:$0 sm:$0xff]  ;;  %p421_p10 = scmp.ne.s32.totalorder %s279_s9, %s420_s10  ;;  %p426_p12 = scmp.lt.s32.totalorder %s420_s10, %s420_s10 }
  0x3b   :  { %336 = vmatprep.subr.bf16.mxu0 %v335_v6  ;;  %340 = vmatprep.subr.bf16.mxu1 %v339_v9 }
  0x3c   :  { %342 = vmatpush3.bf16.msra.mxu1 %v339_v9  ;;  %p427_p13 = por %p426_p12, %p425_p11 }
  0x3d   :  { %344 = vmatprep.subr.bf16.mxu1 %v343_v13 }
  0x3e   :  { %338 = vmatpush3.bf16.msra.mxu0 %v335_v6  ;;  %v167_v22 = vld [vmem:[#allocation2 + $0x8] sm:$0xff]  ;;  %p428_p0 = pnand %p427_p13, %p421_p10 }
  0x3f   :  { %v166_v23 = vld [vmem:[#allocation2] sm:$0xff] }
  0x40   :  { %346 = vmatpush3.bf16.msra.mxu1 %v343_v13 }
  0x41   :  { %318 = vmatmul.mubr.msk.f32.vlgmr.msra.gmra.mrb[0].mxu0 %vm66_vm0, %v70_v10 }
 0x114   :  { %v319_v16 = vpop.f32.mrb[0].mxu0 }
 0x115   :  { %v161_v17 = vadd.f32 %v319_v16, %v291_v15  ;;  %v155_v18 = vpop.f32.mrb[1].mxu0 }
 0x116   :  { %v156_v19 = vadd.f32 %v291_v15, %v155_v18 }
 0x117   :  { %v165_v21 = vmax.f32 %v161_v17, 0.0 }
 0x118   :  { %v164_v20 = vmax.f32 %v156_v19, 0.0 }
 0x11a   :  { %328 = vmatprep.mubr.msk.f32.mxu1 %vm66_vm0, %v164_v20 }
 0x11b   :  { %329 = vmatmul.mubr.msk.f32.vlgmr.msra.gmra.mrb[0].mxu1 %vm66_vm0, %v165_v21 }
 0x1ee   :  { %v330_v24 = vpop.f32.mrb[0].mxu1 }
 0x1ef   :  { %v254_v25 = vadd.f32 %v330_v24, %v167_v22  ;;  %v244_v26 = vpop.f32.mrb[1].mxu1 }
 0x1f0   :  { %v253_v27 = vadd.f32 %v244_v26, %v166_v23 }
 0x1f1   :  { %256 = vst.msk [vmem:[#allocation2 + $0x8] sm:$0xff] %vm66_vm0, %v254_v25 }
 0x1f2   :  { %255 = vst.msk [vmem:[#allocation2] sm:$0xff] %vm66_vm0, %v253_v27 }
 0x1f8   :  { %v261_v29 = vld [vmem:[#allocation2 + $0x8] sm:$0xff] }
 0x1f9   :  { %v260_v30 = vld [vmem:[#allocation2] sm:$0xff]  ;;  %v270_v31 = vadd.f32 %v296_v28, %v261_v29 }
 0x1fa   :  { %v269_v32 = vadd.f32 %v296_v28, %v260_v30 }
 0x1fb   :  { %272 = vst.msk [vmem:[#allocation9 + $0x8] sm:$0xff] %vm66_vm0, %v270_v31 }
 0x1fc   :  { %271 = vst.msk [vmem:[#allocation9] sm:$0xff] %vm66_vm0, %v269_v32 }
 0x1fd   :  { %431 = shalt.err (!%p428_p0)
}
 0x1fe   :  { %s432_s12 = scalar_lea.hbm %s573_s5, 256 }
 0x1ff   :  { %p433_p1 = scmp.ne.s32.totalorder %s573_s5, %s432_s12  ;;  %p436_p2 = scmp.lt.u32.totalorder %s432_s12, %s573_s5 }
 0x201   :  { %p438_p3 = pnand %p436_p2, %p433_p1 }
 0x203   :  { %441 = shalt.err (!%p438_p3)
}
 0x204   :  { %284 = dma.vmem_to_hbm [thread:$0]  %s279_s9, 256, %s573_s5, [#allocation5], %s450_s30, %s450_s30, %s451_s6  }
 0x205   :  { %446 = dma.done.wait [#allocation5], 256  }
 0x206   :  { %447 = vsyncadd [#allocation5], 4294967040 }
 0x207   :  { %288 = vsyncpa [#allocation4], 1 }
 0x208   :  { %289 = vsyncpa [#allocation7], 1 }
 0x209   :  { %290 = vsyncpa [#allocation5], 1 }

</bundles_post_ra>
